<compile_context>
chip_gen: v7x
topology: tpu7x:2x2x1
jax: 0.10.0
libtpu: 0.0.40
codegen_flags: <defaults>
</compile_context>

<pallas_src>
import functools

import jax
import jax.numpy as jnp
from jax import lax
from jax.experimental import pallas as pl
from jax.experimental.pallas import tpu as pltpu


def _round_up(x, m):
    return (x + m - 1) // m * m


def _conv1d_relu_kernel(x_ref, w_ref, b_ref, o_ref, xs_ref, slab_ref, *,
                        cin, cin_pad, ksize, b_blk, l_in, l_pad, padding,
                        w_cols):
    """One batch block: im2col staging + a single fused MXU contraction.

    x_ref:    (1, Cin, b_blk*L)        batch block, channel-major, flat lanes
    w_ref:    (Cout_pad, K*Cin_pad)    fused weight, row index = k*Cin_pad + c
    b_ref:    (Cout_pad, 1)            bias (zero rows for padded Cout)
    o_ref:    (1, Cout_pad, W)         W = round_up(b_blk*L_pad, 128)
    xs_ref:   (Cin_pad, W + K - 1)     VMEM staging buffer with zero halos
    slab_ref: (K*Cin_pad, W)           VMEM im2col slab (8-aligned tap groups)
    """
    # Zero the staging buffer only on the FIRST grid step: scratch persists
    # across iterations and all data columns are overwritten below, so only the
    # pad/halo/slack columns and padded-channel rows ever need zeros.
    @pl.when(pl.program_id(0) == 0)
    def _():
        xs_ref[...] = jnp.zeros_like(xs_ref)

    # Stage the block with in-kernel zero padding:
    #   xs[c, b*L_pad + padding + j] = x[b, c, j];  other columns stay 0.
    if padding == 0:
        # Batch segments are already contiguous -> one bulk copy.
        xs_ref[:cin, :b_blk * l_in] = x_ref[0]
    else:
        for b in range(b_blk):            # small static unrolled loop
            dst = b * l_pad + padding
            xs_ref[:cin, dst:dst + l_in] = x_ref[0, :, b * l_in:(b + 1) * l_in]

    # im2col with sublane-aligned taps: each tap copies the full (zero-padded)
    # channel group -> whole-tile sublane stores; the padded rows hit zero
    # weight columns so the contraction result is unchanged.
    for kk in range(ksize):
        slab_ref[kk * cin_pad:(kk + 1) * cin_pad, :] = xs_ref[:, kk:kk + w_cols]

    # Single fused matmul over the (K*Cin_pad) contraction with f32 MXU
    # accumulation, bias + ReLU on the VPU in f32, one lane-dense store.
    acc = jnp.dot(w_ref[...], slab_ref[...], preferred_element_type=jnp.float32)
    acc = jnp.maximum(acc + b_ref[...], 0.0)
    o_ref[0] = acc.astype(o_ref.dtype)


def _pick_batch_block(n, l_pad, max_block_lanes):
    """Prefer a single grid step (fewer steps = less fixed per-step overhead;
    v5e/v6e have a single TensorCore so a 'parallel' axis cannot shard anything
    at these sizes).  Only split the batch when the flattened lane width would
    exceed the lane budget; then take the largest divisor of n that fits."""
    if n * l_pad <= max_block_lanes:
        return n
    best = 1
    for d in range(1, n + 1):
        if n % d == 0 and d * l_pad <= max_block_lanes:
            best = d
    return best


def cnn1d_relu(x, weight, bias, *, stride=1, padding=0,
               cast_operands_to_bf16=False, max_block_lanes=4096):
    """Pallas TPU implementation of F.relu(Conv1d(x)) (PyTorch NCL layout).

    x:      (N, Cin, L)       float32
    weight: (Cout, Cin, K)    float32
    bias:   (Cout,)           float32
    returns (N, Cout, L_out)  float32,  L_out = (L + 2*pad - K)//stride + 1
    """
    n, cin, l_in = x.shape
    cout, cin_w, ksize = weight.shape
    assert cin == cin_w, (cin, cin_w)
    l_pad = l_in + 2 * padding
    l_out = (l_pad - ksize) // stride + 1
    assert l_out >= 1, "output length must be positive"
    # The wrapper keeps only output positions p in {0, stride, ..., (l_out-1)*stride}
    # inside each b*l_pad segment; their taps read columns <= (l_out-1)*stride+K-1
    # which is < l_pad, so the cross-segment / slack contamination in the
    # discarded tail columns never reaches the result.
    assert (l_out - 1) * stride + ksize <= l_pad

    op_dtype = jnp.bfloat16 if cast_operands_to_bf16 else x.dtype
    sub = 16 if cast_operands_to_bf16 else 8      # sublanes per tile per dtype
    cin_pad = _round_up(cin, sub)                 # 8-aligned per-tap channel stride
    cout_pad = _round_up(cout, 8)                 # f32 acc/bias/output -> 8 rows

    b_blk = _pick_batch_block(n, l_pad, max_block_lanes)
    nb = n // b_blk
    w_use = b_blk * l_pad                    # useful slab / output columns
    w_cols = _round_up(w_use, 128)           # lane-dense width (unmasked stores)
    s_cols = w_cols + ksize - 1              # staging width incl. tap slack

    # Layout plumbing (cheap, one-off): channel-major batch-flattened lanes for
    # the activations; fused (Cout_pad, K*Cin_pad) weight matching the slab rows
    # (zero columns for padded channels, zero rows for padded Cout).
    x2 = jnp.transpose(x.reshape(nb, b_blk, cin, l_in), (0, 2, 1, 3))
    x2 = x2.reshape(nb, cin, b_blk * l_in).astype(op_dtype)
    w2 = jnp.transpose(weight, (0, 2, 1))                         # (Cout, K, Cin)
    w2 = jnp.pad(w2, ((0, cout_pad - cout), (0, 0), (0, cin_pad - cin)))
    w2 = w2.reshape(cout_pad, ksize * cin_pad).astype(op_dtype)
    b2 = jnp.pad(bias, (0, cout_pad - cout)).reshape(cout_pad, 1)
    b2 = b2.astype(jnp.float32)

    kernel = functools.partial(
        _conv1d_relu_kernel, cin=cin, cin_pad=cin_pad, ksize=ksize,
        b_blk=b_blk, l_in=l_in, l_pad=l_pad, padding=padding, w_cols=w_cols)

    flops = 2 * nb * cout_pad * (ksize * cin_pad) * w_cols
    bytes_accessed = (x2.size * x2.dtype.itemsize
                      + w2.size * w2.dtype.itemsize
                      + b2.size * 4
                      + nb * cout_pad * w_cols * 4)

    out = pl.pallas_call(
        kernel,
        out_shape=jax.ShapeDtypeStruct((nb, cout_pad, w_cols), jnp.float32),
        grid_spec=pltpu.PrefetchScalarGridSpec(
            num_scalar_prefetch=0,
            grid=(nb,),
            in_specs=[
                pl.BlockSpec((1, cin, b_blk * l_in), lambda i: (i, 0, 0)),
                pl.BlockSpec((cout_pad, ksize * cin_pad), lambda i: (0, 0)),
                pl.BlockSpec((cout_pad, 1), lambda i: (0, 0)),
            ],
            out_specs=pl.BlockSpec((1, cout_pad, w_cols), lambda i: (i, 0, 0)),
            scratch_shapes=[
                pltpu.VMEM((cin_pad, s_cols), op_dtype),
                pltpu.VMEM((ksize * cin_pad, w_cols), op_dtype),
            ],
        ),
        compiler_params=pltpu.CompilerParams(
            dimension_semantics=("parallel",)),
        cost_estimate=pl.CostEstimate(
            flops=flops, transcendentals=0, bytes_accessed=bytes_accessed),
    )(x2, w2, b2)

    # Drop the Cout / lane padding, pick the stride-selected output positions,
    # and restore the PyTorch (N, Cout, L_out) layout.
    y = out[:, :cout, :w_use].reshape(nb, cout, b_blk, l_pad)
    y = y[:, :, :, :(l_out - 1) * stride + 1:stride]
    return jnp.transpose(y, (0, 2, 1, 3)).reshape(n, cout, l_out).astype(x.dtype)


def _reference_conv1d_relu(x, weight, bias, *, stride=1, padding=0):
    # Pure-JAX reference (NCL / OIK, same as PyTorch Conv1d).
    y = lax.conv_general_dilated(
        x, weight, window_strides=(stride,), padding=[(padding, padding)],
        dimension_numbers=("NCH", "OIH", "NCH"))
    return jnp.maximum(y + bias[None, :, None], 0.0)


def _check(x, weight, bias, *, stride, padding, bf16=False,
           max_block_lanes=4096, atol=1e-5, rtol=1e-5):
    out = jax.block_until_ready(cnn1d_relu(
        x, weight, bias, stride=stride, padding=padding,
        cast_operands_to_bf16=bf16, max_block_lanes=max_block_lanes))
    ref = _reference_conv1d_relu(x, weight, bias, stride=stride, padding=padding)
    assert out.shape == ref.shape, (out.shape, ref.shape)
    assert jnp.allclose(out, ref, atol=atol, rtol=rtol), \
        f"mismatch vs reference (stride={stride}, padding={padding}, bf16={bf16})"


if __name__ == "__main__":
    # CNN1dkernel-consistent config: ninchannel=4, nkernel=3, kernelSize=3.
    ninchannel, nkernel, kernel_size = 4, 3, 3
    batch, length = 16, 16

    key = jax.random.PRNGKey(0)
    kx, kw, kb = jax.random.split(key, 3)
    x = jax.random.normal(kx, (batch, ninchannel, length), dtype=jnp.float32)

    # PyTorch Conv1d-style init: U(-1/sqrt(fan_in), 1/sqrt(fan_in)).
    fan_in = ninchannel * kernel_size
    bound = 1.0 / float(fan_in) ** 0.5
    weight = jax.random.uniform(kw, (nkernel, ninchannel, kernel_size),
                                dtype=jnp.float32, minval=-bound, maxval=bound)
    bias = jax.random.uniform(kb, (nkernel,), dtype=jnp.float32,
                              minval=-bound, maxval=bound)

    # Module defaults (stride=1, padding=0): single grid step, lane-dense out.
    _check(x, weight, bias, stride=1, padding=0)
    # In-kernel zero-padding path.
    _check(x, weight, bias, stride=1, padding=2)
    # Strided conv + padding (batch=4), still one grid step.
    _check(x[:4], weight, bias, stride=2, padding=1)
    # Multi-step grid (nb=2): exercises zero-once staging + scratch persistence.
    _check(x, weight, bias, stride=1, padding=0, max_block_lanes=128)
    _check(x, weight, bias, stride=1, padding=2, max_block_lanes=160)
    # bf16 operand path (v6e/v7x MXU-native; f32 accumulation), relaxed tol.
    _check(x, weight, bias, stride=1, padding=0, bf16=True, atol=2e-2, rtol=2e-2)

    print("KERNEL_OK")
</pallas_src>

<mosaic_0001>
module attributes {stable_mosaic.version = 11 : i64} {
  func.func @_conv1d_relu_kernel(%arg0: i32, %arg1: memref<1x4x256xf32, #tpu.memory_space<vmem>>, %arg2: memref<8x24xf32, #tpu.memory_space<vmem>>, %arg3: memref<8x1xf32, #tpu.memory_space<vmem>>, %arg4: memref<1x8x256xf32, #tpu.memory_space<vmem>>, %arg5: memref<8x258xf32, #tpu.memory_space<vmem>>, %arg6: memref<24x256xf32, #tpu.memory_space<vmem>>) attributes {dimension_semantics = [#tpu.dimension_semantics<parallel>], iteration_bounds = array<i64: 1>, scalar_prefetch = 0 : i64, scratch_operands = 2 : i64, tpu.core_type = #tpu.core_type<tc>, window_params = [{transform_indices = @transform_0, window_bounds = array<i64: 1, 4, 256>}, {pipeline_mode = #tpu.pipeline_mode<synchronous>, transform_indices = @transform_1, window_bounds = array<i64: 8, 24>}, {pipeline_mode = #tpu.pipeline_mode<synchronous>, transform_indices = @transform_2, window_bounds = array<i64: 8, 1>}, {transform_indices = @transform_3, window_bounds = array<i64: 1, 8, 256>}]} {
    %c0_i32 = arith.constant 0 : i32
    %0 = arith.cmpi eq, %arg0, %c0_i32 : i32
    %1 = arith.extui %0 : i1 to i32
    %c0_i32_0 = arith.constant 0 : i32
    %2 = arith.cmpi ne, %1, %c0_i32_0 : i32
    scf.if %2 {
      %cst_23 = arith.constant 0.000000e+00 : f32
      %23 = vector.broadcast %cst_23 : f32 to vector<8x258xf32>
      %c0_24 = arith.constant 0 : index
      %c0_25 = arith.constant 0 : index
      %24 = vector.load %arg5[%c0_24, %c0_25] : memref<8x258xf32, #tpu.memory_space<vmem>>, vector<8x258xf32>
      tpu.vector_store %arg5[%c0_24, %c0_25], %23 {strides = array<i32>} : memref<8x258xf32, #tpu.memory_space<vmem>>, vector<8x258xf32>,
    } else {
    }
    %c0 = arith.constant 0 : index
    %c0_1 = arith.constant 0 : index
    %c0_2 = arith.constant 0 : index
    %3 = vector.load %arg1[%c0, %c0_1, %c0_2] : memref<1x4x256xf32, #tpu.memory_space<vmem>>, vector<1x4x256xf32>
    %4 = vector.shape_cast %3 : vector<1x4x256xf32> to vector<4x256xf32>
    %c0_3 = arith.constant 0 : index
    %c0_4 = arith.constant 0 : index
    %5 = vector.load %arg5[%c0_3, %c0_4] : memref<8x258xf32, #tpu.memory_space<vmem>>, vector<4x256xf32>
    tpu.vector_store %arg5[%c0_3, %c0_4], %4 {strides = array<i32>} : memref<8x258xf32, #tpu.memory_space<vmem>>, vector<4x256xf32>,
    %c0_5 = arith.constant 0 : index
    %c0_6 = arith.constant 0 : index
    %6 = vector.load %arg5[%c0_5, %c0_6] : memref<8x258xf32, #tpu.memory_space<vmem>>, vector<8x256xf32>
    %c0_7 = arith.constant 0 : index
    %c0_8 = arith.constant 0 : index
    %7 = vector.load %arg6[%c0_7, %c0_8] : memref<24x256xf32, #tpu.memory_space<vmem>>, vector<8x256xf32>
    tpu.vector_store %arg6[%c0_7, %c0_8], %6 {strides = array<i32>} : memref<24x256xf32, #tpu.memory_space<vmem>>, vector<8x256xf32>,
    %c0_9 = arith.constant 0 : index
    %c1 = arith.constant 1 : index
    %8 = vector.load %arg5[%c0_9, %c1] : memref<8x258xf32, #tpu.memory_space<vmem>>, vector<8x256xf32>
    %c8 = arith.constant 8 : index
    %c0_10 = arith.constant 0 : index
    %9 = vector.load %arg6[%c8, %c0_10] : memref<24x256xf32, #tpu.memory_space<vmem>>, vector<8x256xf32>
    tpu.vector_store %arg6[%c8, %c0_10], %8 {strides = array<i32>} : memref<24x256xf32, #tpu.memory_space<vmem>>, vector<8x256xf32>,
    %c0_11 = arith.constant 0 : index
    %c2 = arith.constant 2 : index
    %10 = vector.load %arg5[%c0_11, %c2] : memref<8x258xf32, #tpu.memory_space<vmem>>, vector<8x256xf32>
    %c16 = arith.constant 16 : index
    %c0_12 = arith.constant 0 : index
    %11 = vector.load %arg6[%c16, %c0_12] : memref<24x256xf32, #tpu.memory_space<vmem>>, vector<8x256xf32>
    tpu.vector_store %arg6[%c16, %c0_12], %10 {strides = array<i32>} : memref<24x256xf32, #tpu.memory_space<vmem>>, vector<8x256xf32>,
    %c0_13 = arith.constant 0 : index
    %c0_14 = arith.constant 0 : index
    %12 = vector.load %arg2[%c0_13, %c0_14] : memref<8x24xf32, #tpu.memory_space<vmem>>, vector<8x24xf32>
    %c0_15 = arith.constant 0 : index
    %c0_16 = arith.constant 0 : index
    %13 = vector.load %arg6[%c0_15, %c0_16] : memref<24x256xf32, #tpu.memory_space<vmem>>, vector<24x256xf32>
    %cst = arith.constant dense<0.000000e+00> : vector<8x256xf32>
    %14 = tpu.matmul %12, %13, %cst {dimension_numbers = #tpu.dot_dimension_numbers<[1], [0], [0], [1], [0, 0, 1, 1], [], []>} : vector<8x24xf32>, vector<24x256xf32>, vector<8x256xf32> -> vector<8x256xf32>
    %c0_17 = arith.constant 0 : index
    %c0_18 = arith.constant 0 : index
    %15 = vector.load %arg3[%c0_17, %c0_18] : memref<8x1xf32, #tpu.memory_space<vmem>>, vector<8x1xf32>
    %16 = vector.broadcast %15 : vector<8x1xf32> to vector<8x256xf32>
    %17 = arith.addf %14, %16 : vector<8x256xf32>
    %cst_19 = arith.constant 0.000000e+00 : f32
    %18 = vector.broadcast %cst_19 : f32 to vector<8x256xf32>
    %19 = arith.maximumf %17, %18 : vector<8x256xf32>
    %c0_20 = arith.constant 0 : index
    %c0_21 = arith.constant 0 : index
    %c0_22 = arith.constant 0 : index
    %20 = vector.load %arg4[%c0_20, %c0_21, %c0_22] : memref<1x8x256xf32, #tpu.memory_space<vmem>>, vector<1x8x256xf32>
    %21 = vector.shape_cast %20 : vector<1x8x256xf32> to vector<8x256xf32>
    %22 = vector.shape_cast %19 : vector<8x256xf32> to vector<1x8x256xf32>
    tpu.vector_store %arg4[%c0_20, %c0_21, %c0_22], %22 {strides = array<i32>} : memref<1x8x256xf32, #tpu.memory_space<vmem>>, vector<1x8x256xf32>,
    return
  }
  func.func @transform_0(%arg0: i32) -> (i32, i32, i32) {
    %c0_i32 = arith.constant 0 : i32
    %c0_i32_0 = arith.constant 0 : i32
    %c0_i32_1 = arith.constant 0 : i32
    return %arg0, %c0_i32, %c0_i32_0 : i32, i32, i32
  }
  func.func @transform_1(%arg0: i32) -> (i32, i32) {
    %c0_i32 = arith.constant 0 : i32
    %c0_i32_0 = arith.constant 0 : i32
    %c0_i32_1 = arith.constant 0 : i32
    return %c0_i32, %c0_i32_0 : i32, i32
  }
  func.func @transform_2(%arg0: i32) -> (i32, i32) {
    %c0_i32 = arith.constant 0 : i32
    %c0_i32_0 = arith.constant 0 : i32
    %c0_i32_1 = arith.constant 0 : i32
    return %c0_i32, %c0_i32_0 : i32, i32
  }
  func.func @transform_3(%arg0: i32) -> (i32, i32, i32) {
    %c0_i32 = arith.constant 0 : i32
    %c0_i32_0 = arith.constant 0 : i32
    %c0_i32_1 = arith.constant 0 : i32
    return %arg0, %c0_i32, %c0_i32_0 : i32, i32, i32
  }
}

</mosaic_0001>

<bundles_post_ra>
// kernel: tpu_custom_call.1
= control target key start
LH: loop header
LB: loop body
LE: loop exit
PB: predicated region body
PF: predicated region fallthrough
CT: control target
= control target key end

     0   :  { %8 = vsyncpa [#allocation5], 0  ;;  %s313_s0 = inlined_call_operand.vmem [shape: f32[1,4,256], index: 0, kind: input, shape index: {}]   ;;  %s314_s1 = inlined_call_operand.hbm [shape: f32[8,24], index: 1, kind: input, shape index: {}]   ;;  %s315_s2 = inlined_call_operand.vmem [shape: f32[8,1], index: 2, kind: input, shape index: {}]   ;;  %s316_s3 = inlined_call_operand.hbm [shape: f32[1,8,256], index: 3, kind: output, shape index: {}]  }
   0x1   :  { %9 = vsyncpa [#allocation6], 0  ;;  %s257_s12 = smov [#allocation4]   ;;  %s209_s16 = scalar_lea.hbm %s314_s1, 128 }
   0x2   :  { %s18_s13 = sshll.u32 %s257_s12, 4  ;;  %p210_p0 = scmp.ne.s32.totalorder %s314_s1, %s209_s16  ;;  %s19_s13 = int_to_ptr.vmem [resolvable:$true] %s18_s13 }
   0x3   :  { %p213_p1 = scmp.lt.u32.totalorder %s209_s16, %s314_s1 }
   0x5   :  { %p215_p2 = pnand %p213_p1, %p210_p0 }
   0x7   :  { %218 = shalt.err (!%p215_p2)
}
   0x8   :  { %s219_s21 = scalar_lea.vmem %s19_s13, 128  ;;  %p224_p4 = scmp.lt.s32.totalorder %s19_s13, %s19_s13 }
   0x9   :  { %p220_p3 = scmp.ne.s32.totalorder %s19_s13, %s219_s21  ;;  %p225_p5 = scmp.lt.s32.totalorder %s219_s21, %s219_s21 }
   0xb   :  { %p226_p6 = por %p225_p5, %p224_p4 }
   0xd   :  { %p227_p7 = pnand %p226_p6, %p220_p3 }
   0xf   :  { %230 = shalt.err (!%p227_p7)
}
  0x10   :  { %21 = dma.hbm_to_vmem [thread:$0]  %s314_s1, 128, %s19_s13, [#allocation5]  }
  0x11   :  { %253 = dma.done.wait [#allocation5], 128  }
  0x12   :  { %254 = vsyncadd [#allocation5], 4294967168  ;;  %vm33_vm0 = vcmask 15360   ;;  %v258_v0 = vmov 0.0   ;;  %v35_v1 = vld [vmem:[%s313_s0] sm:$0xff]  ;;  %s259_s26 = smov 126  }
  0x13   :  { %32 = vst [vmem:[#allocation2 + $0x8] sm:$0xff] %v258_v0  ;;  %34 = vst.msk [vmem:[#allocation2 + $0x10] sm:$0xff] %vm33_vm0, %v258_v0  ;;  %164 = vmatprep.mubr.f32.mxu0 %v258_v0  ;;  %v37_v2 = vcombine.high %v35_v1, %v35_v1  ;;  %s260_s1 = smov 127   ;;  %v261_v6 = vmov 0   ;;  %v90_v8 = vld [vmem:[%s315_s2] sm:$0xff]  ;;  %vm57_vm1 = vcmask 1039360  }
  0x14   :  { %31 = vst [vmem:[#allocation2] sm:$0xff] %v258_v0  ;;  %206 = vset.pattern.permute.xlu1 %v261_v6  ;;  %207 = vset.pattern.permute.xlu0 %v261_v6  ;;  %vm76_vm2 = vcmask 1031168   ;;  %v83_v21 = vld [vmem:[#allocation4] sm:$0xff]  ;;  %vm96_vm3 = vcmask 195584   ;;  %s262_s0 = smov [#allocation7]  }
  0x15   :  { %39 = vst [vmem:[#allocation2] sm:$0xf] %v35_v1  ;;  %40 = vst [vmem:[#allocation2 + $0x8] sm:$0xf] %v37_v2  ;;  %s181_s2 = sshll.u32 %s262_s0, 4  ;;  %s182_s2 = int_to_ptr.vmem [resolvable:$true] %s181_s2 }
  0x16   :  { %s231_s29 = scalar_lea.vmem %s182_s2, 256  ;;  %p236_p9 = scmp.lt.s32.totalorder %s182_s2, %s182_s2 }
  0x17   :  { %p232_p8 = scmp.ne.s32.totalorder %s182_s2, %s231_s29  ;;  %p237_p10 = scmp.lt.s32.totalorder %s231_s29, %s231_s29 }
  0x19   :  { %p238_p11 = por %p237_p10, %p236_p9 }
  0x1a   :  { %v47_v3 = vld [vmem:[#allocation2 + $0x10] sm:$0xff] }
  0x1b   :  { %p239_p12 = pnand %p238_p11, %p232_p8 }
  0x1c   :  { %v46_v4 = vld [vmem:[#allocation2 + $0x8] sm:$0xff]  ;;  %v45_v7 = vld [vmem:[#allocation2] sm:$0xff] }
  0x1d   :  { %v201_v5 = vpack.i.bf16 %v47_v3, %v46_v4  ;;  %72 = vrot.lane.b32.xlu1 %v46_v4, %s259_s26 }
  0x1f   :  { %202 = vrot.lane.b32.xlu0 %v201_v5, %s260_s1 }
  0x21   :  { %74 = vrot.lane.b32.xlu1 %v47_v3, %s259_s26 }
  0x23   :  { %51 = vrot.lane.b32.xlu0 %v45_v7, %s260_s1 }
  0x25   :  { %93 = vperm.xlu1 %206, %v90_v8  }
  0x27   :  { %70 = vrot.lane.b32.xlu0 %v45_v7, %s259_s26 }
  0x8f   :  { %v73_v9 = vpop.permute.xlu1 %72 }
  0x91   :  { %v203_v10 = vpop.permute.xlu0 %202 }
  0x92   :  { %v205_v11 = vunpack.i.h.bf16 %v203_v10  ;;  %v204_v12 = vunpack.i.l.bf16 %v203_v10 }
  0x93   :  { %v75_v17 = vpop.permute.xlu1 %74 }
  0x94   :  { %v59_v13 = vsel %vm57_vm1, %v204_v12, %v205_v11  ;;  %v78_v20 = vsel %vm76_vm2, %v73_v9, %v75_v17 }
  0x95   :  { %v52_v14 = vpop.permute.xlu0 %51  ;;  %v191_v15 = vpack.c.bf16 %v59_v13, %v46_v4 }
  0x96   :  { %v58_v16 = vsel %vm57_vm1, %v52_v14, %v204_v12 }
  0x97   :  { %192 = vmatprep.subr.bf16.mxu0 %v191_v15  ;;  %v193_v18 = vpack.c.bf16 %v58_v16, %v45_v7 }
  0x99   :  { %v71_v19 = vpop.permute.xlu0 %70  ;;  %194 = vmatpush1.bf16.msra.mxu0 %v193_v18 }
  0x9a   :  { %104 = vmatprep.subr.mxu0 %v78_v20  ;;  %v77_v22 = vsel %vm76_vm2, %v71_v19, %v73_v9 }
  0x9d   :  { %105 = vmatpush1.msra.mxu0 %v77_v22 }
  0x9e   :  { %190 = vmatmul.mubr.msk.f32.vlgmr.msra.gmra.mrb[0].mxu0 %vm96_vm3, %v83_v21 }
  0xa4   :  { %v94_v23 = vpop.permute.xlu1 %93 }
 0x171   :  { %v166_v24 = vpop.f32.mrb[0].mxu0 }
 0x172   :  { %v167_v25 = vadd.f32 %v166_v24, %v94_v23  ;;  %v168_v26 = vpop.f32.mrb[1].mxu0 }
 0x173   :  { %v169_v27 = vadd.f32 %v168_v26, %v94_v23 }
 0x174   :  { %v171_v28 = vmax.f32 %v167_v25, 0.0 }
 0x175   :  { %v172_v29 = vmax.f32 %v169_v27, 0.0 }
 0x176   :  { %173 = vst [vmem:[#allocation7] sm:$0xff] %v171_v28 }
 0x177   :  { %174 = vst [vmem:[#allocation7 + $0x8] sm:$0xff] %v172_v29 }
 0x178   :  { %242 = shalt.err (!%p239_p12)
}
 0x179   :  { %s243_s5 = scalar_lea.hbm %s316_s3, 256 }
 0x17a   :  { %p244_p13 = scmp.ne.s32.totalorder %s316_s3, %s243_s5  ;;  %p247_p0 = scmp.lt.u32.totalorder %s243_s5, %s316_s3 }
 0x17c   :  { %p249_p1 = pnand %p247_p0, %p244_p13 }
 0x17e   :  { %252 = shalt.err (!%p249_p1)
}
 0x17f   :  { %184 = dma.vmem_to_hbm [thread:$0]  %s182_s2, 256, %s316_s3, [#allocation6]  }
 0x180   :  { %255 = dma.done.wait [#allocation6], 256  }
 0x181   :  { %256 = vsyncadd [#allocation6], 4294967040 }
 0x182   :  { %188 = vsyncpa [#allocation5], 1 }
 0x183   :  { %189 = vsyncpa [#allocation6], 1 }

</bundles_post_ra>
